<compile_context>
chip_gen: v6e
topology: v6e:2x2x1
jax: 0.10.0
libtpu: 0.0.40
codegen_flags: <defaults>
</compile_context>

<pallas_src>
import math

import jax
import jax.numpy as jnp
from jax import lax
from jax.experimental import pallas as pl
from jax.experimental.pallas import tpu as pltpu


def _round_up(v, m):
    return ((v + m - 1) // m) * m


def _shift_left(x, t):
    """y[:, p] = x[:, p + t] for in-range p (wrapped lanes are never read by
    valid pooling anchors).  Lowers to a lane rotate + select (XLU)."""
    n = x.shape[-1]
    t = t % n
    if t == 0:
        return x
    return jnp.concatenate([x[:, t:], x[:, :t]], axis=-1)


def _sliding_max(x, width, spacing):
    """y[:, p] = max_{d in [0,width)} x[:, p + d*spacing], built as a log-depth
    shift+max tree (VPU maxima, XLU shifts) -- no axis reductions."""
    if width <= 1:
        return x
    cur = x
    c = 1
    while 2 * c <= width:
        cur = jnp.maximum(cur, _shift_left(cur, c * spacing))
        c *= 2
    if c < width:
        cur = jnp.maximum(cur, _shift_left(cur, (width - c) * spacing))
    return cur


def _pool_flat(src, row_len, k, s, oh, ow):
    """MaxPool2d(kernel=k, stride=s) on a row-major flat grid src (R, row_len*rows)
    -> (R, oh*ow), row-major.  Works for overlapping / non-divisible windows too
    (window columns never cross an image row for valid anchors)."""
    if k == 1 and s == 1 and oh * ow == src.shape[-1]:
        return src                                   # identity pooling
    wm = _sliding_max(src, k, 1)                      # k consecutive columns
    wm = _sliding_max(wm, k, row_len)                 # then k consecutive rows
    pieces = [wm[:, i * s * row_len + j * s: i * s * row_len + j * s + 1]
              for i in range(oh) for j in range(ow)]
    return pieces[0] if len(pieces) == 1 else jnp.concatenate(pieces, axis=-1)


def _make_fused_kernel(in_size, level_params):
    """Fused multi-level SPP kernel over a lane-dense (rows, H*W) block.

    level_params: tuple of (out_size, k, s, oh, ow), in output order.
    Exact (k == s, divisible) levels are computed coarse-from-fine so coarser
    levels reuse already-pooled finer grids (tiny, lane-resident)."""
    order = sorted(range(len(level_params)), key=lambda i: -level_params[i][0])

    def kernel(x_ref, o_ref):
        x = x_ref[...]                                # (R, H*W), lane-dense
        cache = {in_size: x}                          # exact pooled flat grids
        packed = [None] * len(level_params)
        for idx in order:
            out_size, k, s, oh, ow = level_params[idx]
            exact = (k == s and oh == out_size and ow == out_size
                     and in_size % out_size == 0)
            if exact:
                src_size = min(g for g in cache if g % out_size == 0)
                f = src_size // out_size
                pooled = _pool_flat(cache[src_size], src_size, f, f,
                                    out_size, out_size)
                cache[out_size] = pooled
            else:
                # TODO(synk): overlapping / non-divisible windows take the
                # general (non-hierarchical) path straight from x.
                pooled = _pool_flat(x, in_size, k, s, oh, ow)
            packed[idx] = pooled
        # Single packed store -> one output writeback DMA per grid step.
        o_ref[...] = jnp.concatenate(packed, axis=-1).astype(o_ref.dtype)

    return kernel


def _pick_block_rows(nc, hw, p_lanes, itemsize, vmem_budget_bytes=10 << 20):
    """Pick the row-block size from the PADDED per-row VMEM footprint:
    double-buffered lane-dense input, double-buffered (128-lane padded) packed
    output, and ~4 input-sized temporaries for the shift/max chains."""
    in_row = _round_up(hw, 128) * itemsize
    out_row = _round_up(p_lanes, 128) * itemsize
    per_row = 2 * in_row + 2 * out_row + 4 * in_row
    cap = max(8, vmem_budget_bytes // per_row)
    # Dual-TensorCore parts (v7x) shard the "parallel" axis across cores: keep
    # >=4 grid steps for large inputs (2 per core -> DMA pipelines), but never
    # shrink below 512-row blocks (amortize ~0.35us/step on single-TC v5e/v6e).
    cap = min(cap, max(512, pl.cdiv(nc, 4)))
    if cap >= nc:
        return nc                                     # whole input in one block
    return max(8, (cap // 8) * 8)                     # keep sublane-aligned tiles


def spp_multi_level(x_nchw, in_size, out_size_list, flatten=False):
    """JAX/Pallas equivalent of SPP_multi_level.forward (input/outputs NCHW)."""
    N, C, H, W = x_nchw.shape
    assert H == in_size and W == in_size
    itemsize = x_nchw.dtype.itemsize

    level_params = []
    for out_size in out_size_list:
        assert in_size >= out_size
        k = math.ceil(in_size / out_size)             # MaxPool2d kernel_size
        s = in_size // out_size                       # MaxPool2d stride
        oh = (H - k) // s + 1
        ow = (W - k) // s + 1
        level_params.append((out_size, k, s, oh, ow))
    level_params = tuple(level_params)

    sizes = [oh * ow for (_, _, _, oh, ow) in level_params]
    offsets = [0]
    for sz in sizes:
        offsets.append(offsets[-1] + sz)
    p_lanes = offsets[-1]                             # packed output width

    nc = N * C
    hw = H * W
    x_flat = x_nchw.reshape(nc, hw)                   # free reshape, lane-dense

    block_rows = _pick_block_rows(nc, hw, p_lanes, itemsize)
    grid = (pl.cdiv(nc, block_rows),)                 # ragged last block masked

    packed = pl.pallas_call(
        _make_fused_kernel(in_size, level_params),
        out_shape=jax.ShapeDtypeStruct((nc, p_lanes), x_nchw.dtype),
        grid_spec=pltpu.PrefetchScalarGridSpec(
            num_scalar_prefetch=0,
            grid=grid,
            in_specs=[pl.BlockSpec((block_rows, hw), lambda g: (g, 0))],
            out_specs=pl.BlockSpec((block_rows, p_lanes), lambda g: (g, 0)),
        ),
        compiler_params=pltpu.CompilerParams(
            dimension_semantics=("parallel",),
            vmem_limit_bytes=32 * 1024 * 1024,
        ),
        cost_estimate=pl.CostEstimate(
            flops=10 * nc * hw,
            transcendentals=0,
            bytes_accessed=nc * (hw + p_lanes) * itemsize,
        ),
    )(x_flat)

    # Split the packed lanes per level; only free reshapes back to NCHW.
    outs_nchw = tuple(
        packed[:, off:off + sz].reshape(N, C, oh, ow)
        for off, sz, (_, _, _, oh, ow) in zip(offsets, sizes, level_params))

    if flatten:
        flat = tuple(o.reshape(N, -1) for o in outs_nchw)
        # TODO(synk): the torch module uses torch.cat(dim=0), which raises for
        # heterogeneous per-level feature widths; standard SPP concatenates on
        # the feature axis, so axis=1 is used here.
        return jnp.concatenate(flat, axis=1)
    return outs_nchw


def _reference_level(x_nchw, k, s):
    """Pure-JAX reference: MaxPool2d(kernel_size=k, stride=s), NCHW."""
    return lax.reduce_window(
        x_nchw, -jnp.inf, lax.max,
        window_dimensions=(1, 1, k, k),
        window_strides=(1, 1, s, s),
        padding="VALID")


if __name__ == "__main__":
    # Module config: SPP_multi_level(in_size=16, out_size_list=[1, 2, 4])
    in_size = 16
    out_size_list = [1, 2, 4]

    key = jax.random.PRNGKey(0)
    x = jax.random.normal(key, (2, 4, in_size, in_size), dtype=jnp.float32)

    outs = spp_multi_level(x, in_size, out_size_list, flatten=False)
    outs = jax.block_until_ready(outs)

    for o, out_size in zip(outs, out_size_list):
        k = math.ceil(in_size / out_size)
        s = in_size // out_size
        ref = _reference_level(x, k, s)
        assert o.shape == ref.shape, (o.shape, ref.shape)
        assert jnp.allclose(o, ref), f"mismatch at out_size={out_size}"

    flat = jax.block_until_ready(
        spp_multi_level(x, in_size, out_size_list, flatten=True))
    n_feat = sum(4 * o * o for o in out_size_list)
    assert flat.shape == (2, n_feat), flat.shape

    print("KERNEL_OK")
</pallas_src>

<mosaic_0001>
module attributes {stable_mosaic.version = 11 : i64} {
  func.func @kernel(%arg0: i32, %arg1: memref<8x256xf32, #tpu.memory_space<vmem>>, %arg2: memref<8x21xf32, #tpu.memory_space<vmem>>) attributes {dimension_semantics = [#tpu.dimension_semantics<parallel>], iteration_bounds = array<i64: 1>, scalar_prefetch = 0 : i64, scratch_operands = 0 : i64, tpu.core_type = #tpu.core_type<tc>, window_params = [{transform_indices = @transform_0, window_bounds = array<i64: 8, 256>}, {transform_indices = @transform_1, window_bounds = array<i64: 8, 21>}]} {
    %c0 = arith.constant 0 : index
    %c0_0 = arith.constant 0 : index
    %0 = vector.load %arg1[%c0, %c0_0] : memref<8x256xf32, #tpu.memory_space<vmem>>, vector<8x256xf32>
    %1 = vector.extract_strided_slice %0 {offsets = [0, 1], sizes = [8, 255], strides = [1, 1]} : vector<8x256xf32> to vector<8x255xf32>
    %2 = vector.extract_strided_slice %0 {offsets = [0, 0], sizes = [8, 1], strides = [1, 1]} : vector<8x256xf32> to vector<8x1xf32>
    %3 = tpu.concatenate %1, %2 in 1 : vector<8x255xf32>, vector<8x1xf32> -> vector<8x256xf32>
    %4 = arith.maximumf %0, %3 : vector<8x256xf32>
    %5 = vector.extract_strided_slice %4 {offsets = [0, 2], sizes = [8, 254], strides = [1, 1]} : vector<8x256xf32> to vector<8x254xf32>
    %6 = vector.extract_strided_slice %4 {offsets = [0, 0], sizes = [8, 2], strides = [1, 1]} : vector<8x256xf32> to vector<8x2xf32>
    %7 = tpu.concatenate %5, %6 in 1 : vector<8x254xf32>, vector<8x2xf32> -> vector<8x256xf32>
    %8 = arith.maximumf %4, %7 : vector<8x256xf32>
    %9 = vector.extract_strided_slice %8 {offsets = [0, 16], sizes = [8, 240], strides = [1, 1]} : vector<8x256xf32> to vector<8x240xf32>
    %10 = vector.extract_strided_slice %8 {offsets = [0, 0], sizes = [8, 16], strides = [1, 1]} : vector<8x256xf32> to vector<8x16xf32>
    %11 = tpu.concatenate %9, %10 in 1 : vector<8x240xf32>, vector<8x16xf32> -> vector<8x256xf32>
    %12 = arith.maximumf %8, %11 : vector<8x256xf32>
    %13 = vector.extract_strided_slice %12 {offsets = [0, 32], sizes = [8, 224], strides = [1, 1]} : vector<8x256xf32> to vector<8x224xf32>
    %14 = vector.extract_strided_slice %12 {offsets = [0, 0], sizes = [8, 32], strides = [1, 1]} : vector<8x256xf32> to vector<8x32xf32>
    %15 = tpu.concatenate %13, %14 in 1 : vector<8x224xf32>, vector<8x32xf32> -> vector<8x256xf32>
    %16 = arith.maximumf %12, %15 : vector<8x256xf32>
    %17 = vector.extract_strided_slice %16 {offsets = [0, 0], sizes = [8, 1], strides = [1, 1]} : vector<8x256xf32> to vector<8x1xf32>
    %18 = vector.extract_strided_slice %16 {offsets = [0, 4], sizes = [8, 1], strides = [1, 1]} : vector<8x256xf32> to vector<8x1xf32>
    %19 = vector.extract_strided_slice %16 {offsets = [0, 8], sizes = [8, 1], strides = [1, 1]} : vector<8x256xf32> to vector<8x1xf32>
    %20 = vector.extract_strided_slice %16 {offsets = [0, 12], sizes = [8, 1], strides = [1, 1]} : vector<8x256xf32> to vector<8x1xf32>
    %21 = vector.extract_strided_slice %16 {offsets = [0, 64], sizes = [8, 1], strides = [1, 1]} : vector<8x256xf32> to vector<8x1xf32>
    %22 = vector.extract_strided_slice %16 {offsets = [0, 68], sizes = [8, 1], strides = [1, 1]} : vector<8x256xf32> to vector<8x1xf32>
    %23 = vector.extract_strided_slice %16 {offsets = [0, 72], sizes = [8, 1], strides = [1, 1]} : vector<8x256xf32> to vector<8x1xf32>
    %24 = vector.extract_strided_slice %16 {offsets = [0, 76], sizes = [8, 1], strides = [1, 1]} : vector<8x256xf32> to vector<8x1xf32>
    %25 = vector.extract_strided_slice %16 {offsets = [0, 128], sizes = [8, 1], strides = [1, 1]} : vector<8x256xf32> to vector<8x1xf32>
    %26 = vector.extract_strided_slice %16 {offsets = [0, 132], sizes = [8, 1], strides = [1, 1]} : vector<8x256xf32> to vector<8x1xf32>
    %27 = vector.extract_strided_slice %16 {offsets = [0, 136], sizes = [8, 1], strides = [1, 1]} : vector<8x256xf32> to vector<8x1xf32>
    %28 = vector.extract_strided_slice %16 {offsets = [0, 140], sizes = [8, 1], strides = [1, 1]} : vector<8x256xf32> to vector<8x1xf32>
    %29 = vector.extract_strided_slice %16 {offsets = [0, 192], sizes = [8, 1], strides = [1, 1]} : vector<8x256xf32> to vector<8x1xf32>
    %30 = vector.extract_strided_slice %16 {offsets = [0, 196], sizes = [8, 1], strides = [1, 1]} : vector<8x256xf32> to vector<8x1xf32>
    %31 = vector.extract_strided_slice %16 {offsets = [0, 200], sizes = [8, 1], strides = [1, 1]} : vector<8x256xf32> to vector<8x1xf32>
    %32 = vector.extract_strided_slice %16 {offsets = [0, 204], sizes = [8, 1], strides = [1, 1]} : vector<8x256xf32> to vector<8x1xf32>
    %33 = tpu.concatenate %17, %18, %19, %20, %21, %22, %23, %24, %25, %26, %27, %28, %29, %30, %31, %32 in 1 : vector<8x1xf32>, vector<8x1xf32>, vector<8x1xf32>, vector<8x1xf32>, vector<8x1xf32>, vector<8x1xf32>, vector<8x1xf32>, vector<8x1xf32>, vector<8x1xf32>, vector<8x1xf32>, vector<8x1xf32>, vector<8x1xf32>, vector<8x1xf32>, vector<8x1xf32>, vector<8x1xf32>, vector<8x1xf32> -> vector<8x16xf32>
    %34 = vector.extract_strided_slice %33 {offsets = [0, 1], sizes = [8, 15], strides = [1, 1]} : vector<8x16xf32> to vector<8x15xf32>
    %35 = vector.extract_strided_slice %33 {offsets = [0, 0], sizes = [8, 1], strides = [1, 1]} : vector<8x16xf32> to vector<8x1xf32>
    %36 = tpu.concatenate %34, %35 in 1 : vector<8x15xf32>, vector<8x1xf32> -> vector<8x16xf32>
    %37 = arith.maximumf %33, %36 : vector<8x16xf32>
    %38 = vector.extract_strided_slice %37 {offsets = [0, 4], sizes = [8, 12], strides = [1, 1]} : vector<8x16xf32> to vector<8x12xf32>
    %39 = vector.extract_strided_slice %37 {offsets = [0, 0], sizes = [8, 4], strides = [1, 1]} : vector<8x16xf32> to vector<8x4xf32>
    %40 = tpu.concatenate %38, %39 in 1 : vector<8x12xf32>, vector<8x4xf32> -> vector<8x16xf32>
    %41 = arith.maximumf %37, %40 : vector<8x16xf32>
    %42 = vector.extract_strided_slice %41 {offsets = [0, 0], sizes = [8, 1], strides = [1, 1]} : vector<8x16xf32> to vector<8x1xf32>
    %43 = vector.extract_strided_slice %41 {offsets = [0, 2], sizes = [8, 1], strides = [1, 1]} : vector<8x16xf32> to vector<8x1xf32>
    %44 = vector.extract_strided_slice %41 {offsets = [0, 8], sizes = [8, 1], strides = [1, 1]} : vector<8x16xf32> to vector<8x1xf32>
    %45 = vector.extract_strided_slice %41 {offsets = [0, 10], sizes = [8, 1], strides = [1, 1]} : vector<8x16xf32> to vector<8x1xf32>
    %46 = tpu.concatenate %42, %43, %44, %45 in 1 : vector<8x1xf32>, vector<8x1xf32>, vector<8x1xf32>, vector<8x1xf32> -> vector<8x4xf32>
    %47 = vector.extract_strided_slice %46 {offsets = [0, 1], sizes = [8, 3], strides = [1, 1]} : vector<8x4xf32> to vector<8x3xf32>
    %48 = vector.extract_strided_slice %46 {offsets = [0, 0], sizes = [8, 1], strides = [1, 1]} : vector<8x4xf32> to vector<8x1xf32>
    %49 = tpu.concatenate %47, %48 in 1 : vector<8x3xf32>, vector<8x1xf32> -> vector<8x4xf32>
    %50 = arith.maximumf %46, %49 : vector<8x4xf32>
    %51 = vector.extract_strided_slice %50 {offsets = [0, 2], sizes = [8, 2], strides = [1, 1]} : vector<8x4xf32> to vector<8x2xf32>
    %52 = vector.extract_strided_slice %50 {offsets = [0, 0], sizes = [8, 2], strides = [1, 1]} : vector<8x4xf32> to vector<8x2xf32>
    %53 = tpu.concatenate %51, %52 in 1 : vector<8x2xf32>, vector<8x2xf32> -> vector<8x4xf32>
    %54 = arith.maximumf %50, %53 : vector<8x4xf32>
    %55 = vector.extract_strided_slice %54 {offsets = [0, 0], sizes = [8, 1], strides = [1, 1]} : vector<8x4xf32> to vector<8x1xf32>
    %56 = tpu.concatenate %55, %46, %33 in 1 : vector<8x1xf32>, vector<8x4xf32>, vector<8x16xf32> -> vector<8x21xf32>
    %c0_1 = arith.constant 0 : index
    %c0_2 = arith.constant 0 : index
    %57 = vector.load %arg2[%c0_1, %c0_2] : memref<8x21xf32, #tpu.memory_space<vmem>>, vector<8x21xf32>
    tpu.vector_store %arg2[%c0_1, %c0_2], %56 {strides = array<i32>} : memref<8x21xf32, #tpu.memory_space<vmem>>, vector<8x21xf32>,
    return
  }
  func.func @transform_0(%arg0: i32) -> (i32, i32) {
    %c0_i32 = arith.constant 0 : i32
    %c0_i32_0 = arith.constant 0 : i32
    return %arg0, %c0_i32 : i32, i32
  }
  func.func @transform_1(%arg0: i32) -> (i32, i32) {
    %c0_i32 = arith.constant 0 : i32
    %c0_i32_0 = arith.constant 0 : i32
    return %arg0, %c0_i32 : i32, i32
  }
}

</mosaic_0001>

<bundles_post_ra>
// kernel: tpu_custom_call.1
= control target key start
LH: loop header
LB: loop body
LE: loop exit
PB: predicated region body
PF: predicated region fallthrough
CT: control target
= control target key end

     0   :  { %6 = vsyncpa [#allocation3], 0  ;;  %s370_s0 = inlined_call_operand.hbm [shape: f32[8,256], index: 0, kind: input, shape index: {}]   ;;  %s371_s1 = inlined_call_operand.hbm [shape: f32[8,21], index: 1, kind: output, shape index: {}]  }
   0x1   :  { %7 = vsyncpa [#allocation4], 0  ;;  %s300_s6 = smov [#allocation2]  }
   0x2   :  { %s14_s7 = sshll.u32 %s300_s6, 4  ;;  %s15_s7 = int_to_ptr.vmem [resolvable:$true] %s14_s7 }
   0x3   :  { %s264_s8 = scalar_lea.vmem %s15_s7, 256  ;;  %p269_p1 = scmp.lt.s32.totalorder %s15_s7, %s15_s7 }
   0x4   :  { %p265_p0 = scmp.ne.s32.totalorder %s15_s7, %s264_s8  ;;  %p270_p2 = scmp.lt.s32.totalorder %s264_s8, %s264_s8 }
   0x6   :  { %p271_p3 = por %p270_p2, %p269_p1 }
   0x8   :  { %p272_p4 = pnand %p271_p3, %p265_p0 }
   0xa   :  { %275 = shalt.err (!%p272_p4)
}
   0xb   :  { %17 = dma.hbm_to_vmem [thread:$0]  %s370_s0, 256, %s15_s7, [#allocation3]  }
   0xc   :  { %296 = dma.done.wait [#allocation3], 256  }
   0xd   :  { %297 = vsyncadd [#allocation3], 4294967040  ;;  %v21_v0 = vld [vmem:[#allocation2] sm:$0xff]  ;;  %s301_s11 = smov 127   ;;  %v22_v1 = vld [vmem:[#allocation2 + $0x8] sm:$0xff]  ;;  %vm29_vm0 = vcmask 1039360  }
   0xe   :  { %25 = vrot.lane.b32.xlu0 %v21_v0, %s301_s11  ;;  %s302_s12 = smov 126   ;;  %vm43_vm1 = vcmask 1031168   ;;  %s303_s0 = smov 112   ;;  %vm57_vm2 = vcmask 916480   ;;  %vm71_vm3 = vcmask 785408   ;;  %vm126_vm4 = vcmask 7168  }
   0xf   :  { %s304_s13 = smov 96   ;;  %s305_s14 = smov 122   ;;  %vm128_vm5 = vcmask 15360   ;;  %vm130_vm6 = vcmask 23552   ;;  %vm132_vm7 = vcmask 31744   ;;  %vm134_vm8 = vcmask 39936  }
  0x10   :  { %s306_s15 = smov 125   ;;  %s307_s16 = smov 68   ;;  %vm136_vm9 = vcmask 48128   ;;  %vm138_vm10 = vcmask 56320   ;;  %vm140_vm11 = vcmask 64512   ;;  %vm142_vm12 = vcmask 72704  }
  0x11   :  { %s308_s17 = smov 119   ;;  %s309_s18 = smov 62   ;;  %vm144_vm13 = vcmask 80896   ;;  %vm146_vm14 = vcmask 89088   ;;  %vm148_vm15 = vcmask 97280  }
  0x12   :  { %27 = vrot.lane.b32.xlu0 %v22_v1, %s301_s11  ;;  %s310_s19 = smov 65   ;;  %s311_s20 = smov 8  }
  0x13   :  { %s312_s21 = smov 59   ;;  %s313_s22 = smov 2  }
  0x14   :  { %s314_s23 = smov 5   ;;  %s315_s24 = smov 76  }
  0x15   :  { %s316_s25 = smov 70   ;;  %s317_s26 = smov 73  }
  0x16   :  { %s318_s27 = smov 67   ;;  %s319_s28 = smov 15  }
  0x17   :  { %s320_s29 = smov 12   ;;  %s321_s30 = smov 124  }
  0x18   :  { %s322_s2 = smov 121   ;;  %s323_s3 = smov 3  }
  0x19   :  { %s324_s4 = smov 1   ;;  %s325_s5 = smov [#allocation5]  }
  0x1a   :  { %s221_s6 = sshll.u32 %s325_s5, 4  ;;  %s222_s6 = int_to_ptr.vmem [resolvable:$true] %s221_s6 }
  0x1b   :  { %s276_s7 = scalar_lea.vmem %s222_s6, 128  ;;  %p281_p6 = scmp.lt.s32.totalorder %s222_s6, %s222_s6 }
  0x1c   :  { %p277_p5 = scmp.ne.s32.totalorder %s222_s6, %s276_s7  ;;  %p282_p7 = scmp.lt.s32.totalorder %s276_s7, %s276_s7 }
  0x1e   :  { %p283_p8 = por %p282_p7, %p281_p6 }
  0x20   :  { %p284_p9 = pnand %p283_p8, %p277_p5 }
  0x80   :  { %v26_v2 = vpop.permute.xlu0 %25 }
  0x84   :  { %v28_v3 = vpop.permute.xlu0 %27 }
  0x85   :  { %v30_v4 = vsel %vm29_vm0, %v26_v2, %v28_v3  ;;  %v34_v6 = vsel %vm29_vm0, %v28_v3, %v26_v2  ;;  %vm150_vm0 = vcmask 105472  }
  0x86   :  { %v35_v5 = vmax.f32 %v21_v0, %v30_v4  ;;  %v36_v7 = vmax.f32 %v22_v1, %v34_v6 }
  0x88   :  { %39 = vrot.lane.b32.xlu1 %v35_v5, %s302_s12 }
  0x8c   :  { %41 = vrot.lane.b32.xlu1 %v36_v7, %s302_s12 }
  0xfa   :  { %v40_v8 = vpop.permute.xlu1 %39 }
  0xfe   :  { %v42_v9 = vpop.permute.xlu1 %41 }
  0xff   :  { %v44_v10 = vsel %vm43_vm1, %v40_v8, %v42_v9  ;;  %v48_v11 = vsel %vm43_vm1, %v42_v9, %v40_v8  ;;  %vm152_vm1 = vcmask 113664  }
 0x100   :  { %v49_v12 = vmax.f32 %v35_v5, %v44_v10  ;;  %v50_v13 = vmax.f32 %v36_v7, %v48_v11 }
 0x102   :  { %55 = vrot.lane.b32.xlu1 %v50_v13, %s303_s0  ;;  %53 = vrot.lane.b32.xlu0 %v49_v12, %s303_s0 }
 0x174   :  { %v56_v14 = vpop.permute.xlu1 %55  ;;  %v54_v15 = vpop.permute.xlu0 %53 }
 0x175   :  { %v58_v16 = vsel %vm57_vm2, %v54_v15, %v56_v14  ;;  %v62_v17 = vsel %vm57_vm2, %v56_v14, %v54_v15  ;;  %vm154_vm2 = vcmask 121856  }
 0x176   :  { %v63_v18 = vmax.f32 %v49_v12, %v58_v16  ;;  %v64_v19 = vmax.f32 %v50_v13, %v62_v17 }
 0x178   :  { %69 = vrot.lane.b32.xlu1 %v64_v19, %s304_s13  ;;  %67 = vrot.lane.b32.xlu0 %v63_v18, %s304_s13 }
 0x1ea   :  { %v70_v20 = vpop.permute.xlu1 %69  ;;  %v68_v21 = vpop.permute.xlu0 %67 }
 0x1eb   :  { %v72_v22 = vsel %vm71_vm3, %v68_v21, %v70_v20  ;;  %v76_v24 = vsel %vm71_vm3, %v70_v20, %v68_v21  ;;  %vm213_vm3 = vcmask 171008  }
 0x1ec   :  { %v77_v23 = vmax.f32 %v63_v18, %v72_v22  ;;  %v78_v25 = vmax.f32 %v64_v19, %v76_v24 }
 0x1ee   :  { %83 = vrot.lane.b32.xlu1 %v77_v23, %s305_s14  ;;  %80 = vrot.lane.b32.xlu0 %v77_v23, %s306_s15 }
 0x1f2   :  { %89 = vrot.lane.b32.xlu1 %v77_v23, %s307_s16  ;;  %86 = vrot.lane.b32.xlu0 %v77_v23, %s308_s17 }
 0x1f6   :  { %95 = vrot.lane.b32.xlu1 %v77_v23, %s309_s18  ;;  %92 = vrot.lane.b32.xlu0 %v77_v23, %s310_s19 }
 0x1fa   :  { %102 = vrot.lane.b32.xlu1 %v78_v25, %s311_s20  ;;  %98 = vrot.lane.b32.xlu0 %v77_v23, %s312_s21 }
 0x1fe   :  { %108 = vrot.lane.b32.xlu1 %v78_v25, %s313_s22  ;;  %105 = vrot.lane.b32.xlu0 %v78_v25, %s314_s23 }
 0x202   :  { %114 = vrot.lane.b32.xlu1 %v78_v25, %s315_s24  ;;  %111 = vrot.lane.b32.xlu0 %v78_v25, %s301_s11 }
 0x206   :  { %120 = vrot.lane.b32.xlu1 %v78_v25, %s316_s25  ;;  %117 = vrot.lane.b32.xlu0 %v78_v25, %s317_s26 }
 0x20a   :  { %123 = vrot.lane.b32.xlu0 %v78_v25, %s318_s27 }
 0x260   :  { %v84_v26 = vpop.permute.xlu1 %83  ;;  %v81_v27 = vpop.permute.xlu0 %80 }
 0x261   :  { %v127_v28 = vsel %vm126_vm4, %v77_v23, %v81_v27 }
 0x262   :  { %v129_v30 = vsel %vm128_vm5, %v127_v28, %v84_v26 }
 0x264   :  { %v90_v29 = vpop.permute.xlu1 %89  ;;  %v87_v31 = vpop.permute.xlu0 %86 }
 0x265   :  { %v131_v32 = vsel %vm130_vm6, %v129_v30, %v87_v31 }
 0x266   :  { %v133_v34 = vsel %vm132_vm7, %v131_v32, %v90_v29 }
 0x268   :  { %v96_v33 = vpop.permute.xlu1 %95  ;;  %v93_v35 = vpop.permute.xlu0 %92 }
 0x269   :  { %v135_v36 = vsel %vm134_vm8, %v133_v34, %v93_v35 }
 0x26a   :  { %v137_v38 = vsel %vm136_vm9, %v135_v36, %v96_v33 }
 0x26c   :  { %v103_v37 = vpop.permute.xlu1 %102  ;;  %v99_v39 = vpop.permute.xlu0 %98 }
 0x26d   :  { %v139_v40 = vsel %vm138_vm10, %v137_v38, %v99_v39 }
 0x26e   :  { %v141_v42 = vsel %vm140_vm11, %v139_v40, %v103_v37 }
 0x270   :  { %v109_v41 = vpop.permute.xlu1 %108  ;;  %v106_v43 = vpop.permute.xlu0 %105 }
 0x271   :  { %v143_v44 = vsel %vm142_vm12, %v141_v42, %v106_v43 }
 0x272   :  { %v145_v46 = vsel %vm144_vm13, %v143_v44, %v109_v41 }
 0x274   :  { %v115_v45 = vpop.permute.xlu1 %114  ;;  %v112_v47 = vpop.permute.xlu0 %111 }
 0x275   :  { %v147_v48 = vsel %vm146_vm14, %v145_v46, %v112_v47 }
 0x276   :  { %v149_v49 = vsel %vm148_vm15, %v147_v48, %v115_v45 }
 0x278   :  { %v118_v50 = vpop.permute.xlu0 %117  ;;  %v121_v51 = vpop.permute.xlu1 %120 }
 0x279   :  { %v151_v52 = vsel %vm150_vm0, %v149_v49, %v118_v50 }
 0x27a   :  { %v153_v53 = vsel %vm152_vm1, %v151_v52, %v121_v51 }
 0x27c   :  { %v124_v54 = vpop.permute.xlu0 %123 }
 0x27d   :  { %v155_v55 = vsel %vm154_vm2, %v153_v53, %v124_v54 }
 0x27e   :  { %160 = vrot.lane.b32.xlu0 %v155_v55, %s319_s28  ;;  %157 = vrot.lane.b32.xlu1 %v155_v55, %s301_s11 }
 0x2f0   :  { %v161_v56 = vpop.permute.xlu0 %160  ;;  %v158_v57 = vpop.permute.xlu1 %157 }
 0x2f1   :  { %v163_v58 = vsel %vm154_vm2, %v158_v57, %v161_v56 }
 0x2f2   :  { %v164_v59 = vmax.f32 %v155_v55, %v163_v58 }
 0x2f4   :  { %169 = vrot.lane.b32.xlu0 %v164_v59, %s320_s29  ;;  %166 = vrot.lane.b32.xlu1 %v164_v59, %s321_s30 }
 0x366   :  { %v170_v60 = vpop.permute.xlu0 %169  ;;  %v167_v61 = vpop.permute.xlu1 %166 }
 0x367   :  { %v172_v62 = vsel %vm148_vm15, %v167_v61, %v170_v60 }
 0x368   :  { %v173_v63 = vmax.f32 %v164_v59, %v172_v62 }
 0x36a   :  { %178 = vrot.lane.b32.xlu0 %v173_v63, %s305_s14  ;;  %175 = vrot.lane.b32.xlu1 %v173_v63, %s301_s11 }
 0x36e   :  { %181 = vrot.lane.b32.xlu1 %v173_v63, %s322_s2 }
 0x3dc   :  { %v176_v0 = vpop.permute.xlu1 %175  ;;  %v179_v1 = vpop.permute.xlu0 %178 }
 0x3dd   :  { %v184_v2 = vsel %vm126_vm4, %v173_v63, %v176_v0 }
 0x3de   :  { %v185_v3 = vsel %vm128_vm5, %v184_v2, %v179_v1 }
 0x3e0   :  { %v182_v4 = vpop.permute.xlu1 %181 }
 0x3e1   :  { %v186_v5 = vsel %vm130_vm6, %v185_v3, %v182_v4 }
 0x3e2   :  { %191 = vrot.lane.b32.xlu1 %v186_v5, %s323_s3  ;;  %188 = vrot.lane.b32.xlu0 %v186_v5, %s301_s11 }
 0x454   :  { %v192_v6 = vpop.permute.xlu1 %191  ;;  %v189_v7 = vpop.permute.xlu0 %188 }
 0x455   :  { %v194_v8 = vsel %vm130_vm6, %v189_v7, %v192_v6 }
 0x456   :  { %v195_v9 = vmax.f32 %v186_v5, %v194_v8 }
 0x458   :  { %200 = vrot.lane.b32.xlu1 %v195_v9, %s313_s22  ;;  %197 = vrot.lane.b32.xlu0 %v195_v9, %s302_s12 }
 0x45c   :  { %208 = vrot.lane.b32.xlu1 %v155_v55, %s314_s23  ;;  %205 = vrot.lane.b32.xlu0 %v186_v5, %s324_s4 }
 0x4ca   :  { %v201_v10 = vpop.permute.xlu1 %200  ;;  %v198_v11 = vpop.permute.xlu0 %197 }
 0x4cb   :  { %v203_v12 = vsel %vm128_vm5, %v198_v11, %v201_v10 }
 0x4cc   :  { %v204_v13 = vmax.f32 %v195_v9, %v203_v12 }
 0x4ce   :  { %v209_v14 = vpop.permute.xlu1 %208  ;;  %v206_v15 = vpop.permute.xlu0 %205 }
 0x4cf   :  { %v211_v16 = vsel %vm126_vm4, %v204_v13, %v206_v15 }
 0x4d0   :  { %v212_v17 = vsel %vm134_vm8, %v211_v16, %v209_v14 }
 0x4d1   :  { %214 = vst.msk [vmem:[#allocation5] sm:$0xff] %vm213_vm3, %v212_v17 }
 0x4d2   :  { %287 = shalt.err (!%p284_p9)
}
 0x4d3   :  { %224 = dma.vmem_to_hbm [thread:$0]  %s222_s6, 128, %s371_s1, [#allocation4]  }
 0x4d4   :  { %298 = dma.done.wait [#allocation4], 128  }
 0x4d5   :  { %299 = vsyncadd [#allocation4], 4294967168 }
 0x4d6   :  { %228 = vsyncpa [#allocation3], 1 }
 0x4d7   :  { %229 = vsyncpa [#allocation4], 1 }

</bundles_post_ra>
